<compile_context>
chip_gen: v7x
topology: tpu7x:2x2x1
jax: 0.10.0
libtpu: 0.0.40
codegen_flags: <defaults>
</compile_context>

<pallas_src>
import jax
import jax.numpy as jnp
from jax.experimental import pallas as pl
from jax.experimental.pallas import tpu as pltpu


def _round_up(x, m):
    return (x + m - 1) // m * m


def _mlp_kernel(x_ref, w1_ref, b1_ref, w2_ref, b2_ref, w3_ref, b3_ref,
                mask_ref, o_ref):
    # x tile is already bf16 (cast in the wrapper); weights/biases/mask are
    # VMEM-resident (constant index_map), the x/out tiles are pipelined.
    x = x_ref[...]

    # fc1 + ReLU  (bf16 MXU matmul, f32 accumulate; bias/ReLU in f32)
    h1 = jnp.dot(x, w1_ref[...], preferred_element_type=jnp.float32) + b1_ref[...]
    h1 = jnp.maximum(h1, 0.0)

    # fc2 + ReLU
    h2 = jnp.dot(h1.astype(jnp.bfloat16), w2_ref[...],
                 preferred_element_type=jnp.float32) + b2_ref[...]
    h2 = jnp.maximum(h2, 0.0)

    # fc3 + ReLU  (class dim padded to 128 lanes; pad weight cols are zero)
    h3 = jnp.dot(h2.astype(jnp.bfloat16), w3_ref[...],
                 preferred_element_type=jnp.float32) + b3_ref[...]
    # Additive class mask AFTER the ReLU: valid lanes +0, padded lanes -1e30
    # so they never win the max and exp underflows to 0 in the sum.
    h3 = jnp.maximum(h3, 0.0) + mask_ref[...]

    # Numerically stable log_softmax over the class axis (f32 throughout).
    m = jnp.max(h3, axis=-1, keepdims=True)
    shifted = h3 - m
    lse = jnp.log(jnp.sum(jnp.exp(shifted), axis=-1, keepdims=True))
    o_ref[...] = (shifted - lse).astype(o_ref.dtype)


def mlp_forward(x, params, *, return_padded=False):
    """x: (B, prototype_dim) f32.

    Returns (B, num_classes) f32 log-probs, or the raw lane-dense
    (B_pad, C_pad) block if return_padded=True (rows >= B / lanes >= C are
    garbage / -inf-ish and must be ignored by the caller).
    """
    w1, b1, w2, b2, w3, b3 = params
    B, D = x.shape
    H1 = w1.shape[1]
    H2 = w2.shape[1]
    C = w3.shape[1]

    # Lane-dense padded class dimension.
    C_pad = _round_up(C, 128)

    # Batch tile selection:
    #  * small B: whole batch in one tile, rounded to 16 (bf16 sublane pack).
    #  * large B: big tiles (fewer grid steps, better MXU fill) but capped at
    #    2048 (v5e scoped-VMEM headroom) and sized so there are >= 2 tiles
    #    (v7x dual-TC sharding of the "parallel" batch axis).
    if B <= 512:
        TB = _round_up(max(B, 16), 16)
    else:
        TB = min(2048, _round_up(pl.cdiv(B, 2), 256))
    B_pad = _round_up(B, TB)
    num_tiles = B_pad // TB

    # bf16 activation input; fuse the cast with the pad copy when padding is
    # needed, and skip the pad entirely when it is not.
    if B_pad != B:
        x_p = jnp.pad(x, ((0, B_pad - B), (0, 0))).astype(jnp.bfloat16)
    else:
        x_p = x.astype(jnp.bfloat16)

    # bf16 weights (halves weight DMA bytes, native MXU dtype); biases f32, 2D.
    w1b = w1.astype(jnp.bfloat16)
    w2b = w2.astype(jnp.bfloat16)
    w3b = jnp.pad(w3, ((0, 0), (0, C_pad - C))).astype(jnp.bfloat16)
    b1_2d = b1.reshape(1, H1).astype(jnp.float32)
    b2_2d = b2.reshape(1, H2).astype(jnp.float32)
    b3_2d = jnp.pad(b3, ((0, C_pad - C),)).reshape(1, C_pad).astype(jnp.float32)

    # Resident additive class mask: 0 for valid lanes, -1e30 for padded lanes.
    class_mask = jnp.where(jnp.arange(C_pad) < C, 0.0, -1e30)
    class_mask = class_mask.reshape(1, C_pad).astype(jnp.float32)

    resident = lambda shape: pl.BlockSpec(shape, lambda i: (0,) * len(shape))

    flops = 2 * B_pad * (D * H1 + H1 * H2 + H2 * C_pad)
    bytes_accessed = (
        x_p.size * 2                       # bf16 activations in
        + w1b.size * 2 + w2b.size * 2 + w3b.size * 2
        + b1_2d.size * 4 + b2_2d.size * 4 + b3_2d.size * 4
        + class_mask.size * 4
        + B_pad * C_pad * 4                # f32 log-probs out
    )
    cost = pl.CostEstimate(
        flops=flops,
        transcendentals=B_pad * (C_pad + 1),  # exp per padded logit + log per row
        bytes_accessed=bytes_accessed,
    )

    out = pl.pallas_call(
        _mlp_kernel,
        out_shape=jax.ShapeDtypeStruct((B_pad, C_pad), jnp.float32),
        grid=(num_tiles,),
        in_specs=[
            pl.BlockSpec((TB, D), lambda i: (i, 0)),   # x: tiled over batch
            resident((D, H1)),                         # w1
            resident((1, H1)),                         # b1
            resident((H1, H2)),                        # w2
            resident((1, H2)),                         # b2
            resident((H2, C_pad)),                     # w3 (class-padded)
            resident((1, C_pad)),                      # b3 (class-padded)
            resident((1, C_pad)),                      # additive class mask
        ],
        out_specs=pl.BlockSpec((TB, C_pad), lambda i: (i, 0)),
        compiler_params=pltpu.CompilerParams(
            dimension_semantics=("parallel",),
        ),
        cost_estimate=cost,
    )(x_p, w1b, b1_2d, w2b, b2_2d, w3b, b3_2d, class_mask)

    if return_padded:
        return out
    return out[:B, :C]


def init_params(key, prototype_dim, num_classes, hidden=128):
    """Deterministic init mimicking nn.Linear default (uniform +/- 1/sqrt(fan_in))."""
    ks = jax.random.split(key, 6)

    def linear(kw, kb, fan_in, fan_out):
        bound = 1.0 / jnp.sqrt(fan_in)
        w = jax.random.uniform(kw, (fan_in, fan_out), jnp.float32, -bound, bound)
        b = jax.random.uniform(kb, (fan_out,), jnp.float32, -bound, bound)
        return w, b

    w1, b1 = linear(ks[0], ks[1], prototype_dim, hidden)
    w2, b2 = linear(ks[2], ks[3], hidden, hidden)
    w3, b3 = linear(ks[4], ks[5], hidden, num_classes)
    return (w1, b1, w2, b2, w3, b3)


def reference_forward_f32(x, params):
    """Pure-f32 reference (PyTorch semantics)."""
    w1, b1, w2, b2, w3, b3 = params
    h = jax.nn.relu(x @ w1 + b1)
    h = jax.nn.relu(h @ w2 + b2)
    h = jax.nn.relu(h @ w3 + b3)
    return jax.nn.log_softmax(h, axis=1)


def reference_forward_matched(x, params):
    """Reference using the same bf16-at-matmul / f32-accumulate recipe."""
    w1, b1, w2, b2, w3, b3 = params
    dot = lambda a, b: jnp.dot(a.astype(jnp.bfloat16), b.astype(jnp.bfloat16),
                               preferred_element_type=jnp.float32)
    h = jax.nn.relu(dot(x, w1) + b1)
    h = jax.nn.relu(dot(h, w2) + b2)
    h = jax.nn.relu(dot(h, w3) + b3)
    return jax.nn.log_softmax(h, axis=1)


if __name__ == "__main__":
    key = jax.random.PRNGKey(0)
    k_x, k_p = jax.random.split(key)

    batch = 8
    prototype_dim = 32
    num_classes = 10

    x = jax.random.normal(k_x, (batch, prototype_dim), dtype=jnp.float32)
    params = init_params(k_p, prototype_dim, num_classes)

    out = mlp_forward(x, params)
    out = jax.block_until_ready(out)
    assert out.shape == (batch, num_classes)

    # Tight check against a reference using the same matmul dtypes.
    ref_matched = reference_forward_matched(x, params)
    assert jnp.allclose(out, ref_matched, atol=1e-3, rtol=1e-3), \
        "mismatch vs matched (bf16-matmul) reference"

    # Looser sanity check against the pure-f32 PyTorch-equivalent reference.
    ref_f32 = reference_forward_f32(x, params)
    assert jnp.allclose(out, ref_f32, atol=5e-2, rtol=5e-2), \
        "mismatch vs f32 reference"

    print("KERNEL_OK")
</pallas_src>

<mosaic_0001>
module attributes {stable_mosaic.version = 11 : i64} {
  func.func @_mlp_kernel(%arg0: i32, %arg1: memref<16x32xbf16, #tpu.memory_space<vmem>>, %arg2: memref<32x128xbf16, #tpu.memory_space<vmem>>, %arg3: memref<1x128xf32, #tpu.memory_space<vmem>>, %arg4: memref<128x128xbf16, #tpu.memory_space<vmem>>, %arg5: memref<1x128xf32, #tpu.memory_space<vmem>>, %arg6: memref<128x128xbf16, #tpu.memory_space<vmem>>, %arg7: memref<1x128xf32, #tpu.memory_space<vmem>>, %arg8: memref<1x128xf32, #tpu.memory_space<vmem>>, %arg9: memref<16x128xf32, #tpu.memory_space<vmem>>) attributes {dimension_semantics = [#tpu.dimension_semantics<parallel>], iteration_bounds = array<i64: 1>, scalar_prefetch = 0 : i64, scratch_operands = 0 : i64, tpu.core_type = #tpu.core_type<tc>, window_params = [{transform_indices = @transform_0, window_bounds = array<i64: 16, 32>}, {pipeline_mode = #tpu.pipeline_mode<synchronous>, transform_indices = @transform_1, window_bounds = array<i64: 32, 128>}, {pipeline_mode = #tpu.pipeline_mode<synchronous>, transform_indices = @transform_2, window_bounds = array<i64: 1, 128>}, {pipeline_mode = #tpu.pipeline_mode<synchronous>, transform_indices = @transform_3, window_bounds = array<i64: 128, 128>}, {pipeline_mode = #tpu.pipeline_mode<synchronous>, transform_indices = @transform_4, window_bounds = array<i64: 1, 128>}, {pipeline_mode = #tpu.pipeline_mode<synchronous>, transform_indices = @transform_5, window_bounds = array<i64: 128, 128>}, {pipeline_mode = #tpu.pipeline_mode<synchronous>, transform_indices = @transform_6, window_bounds = array<i64: 1, 128>}, {pipeline_mode = #tpu.pipeline_mode<synchronous>, transform_indices = @transform_7, window_bounds = array<i64: 1, 128>}, {transform_indices = @transform_8, window_bounds = array<i64: 16, 128>}]} {
    %c0 = arith.constant 0 : index
    %c0_0 = arith.constant 0 : index
    %0 = vector.load %arg1[%c0, %c0_0] : memref<16x32xbf16, #tpu.memory_space<vmem>>, vector<16x32xbf16>
    %c0_1 = arith.constant 0 : index
    %c0_2 = arith.constant 0 : index
    %1 = vector.load %arg2[%c0_1, %c0_2] : memref<32x128xbf16, #tpu.memory_space<vmem>>, vector<32x128xbf16>
    %cst = arith.constant dense<0.000000e+00> : vector<16x128xf32>
    %2 = tpu.matmul %0, %1, %cst {dimension_numbers = #tpu.dot_dimension_numbers<[1], [0], [0], [1], [0, 0, 1, 1], [], []>} : vector<16x32xbf16>, vector<32x128xbf16>, vector<16x128xf32> -> vector<16x128xf32>
    %c0_3 = arith.constant 0 : index
    %c0_4 = arith.constant 0 : index
    %3 = vector.load %arg3[%c0_3, %c0_4] : memref<1x128xf32, #tpu.memory_space<vmem>>, vector<1x128xf32>
    %4 = vector.broadcast %3 : vector<1x128xf32> to vector<16x128xf32>
    %5 = arith.addf %2, %4 : vector<16x128xf32>
    %cst_5 = arith.constant 0.000000e+00 : f32
    %6 = vector.broadcast %cst_5 : f32 to vector<16x128xf32>
    %7 = arith.maximumf %5, %6 : vector<16x128xf32>
    %8 = arith.truncf %7 : vector<16x128xf32> to vector<16x128xbf16>
    %c0_6 = arith.constant 0 : index
    %c0_7 = arith.constant 0 : index
    %9 = vector.load %arg4[%c0_6, %c0_7] : memref<128x128xbf16, #tpu.memory_space<vmem>>, vector<128x128xbf16>
    %cst_8 = arith.constant dense<0.000000e+00> : vector<16x128xf32>
    %10 = tpu.matmul %8, %9, %cst_8 {dimension_numbers = #tpu.dot_dimension_numbers<[1], [0], [0], [1], [0, 0, 1, 1], [], []>} : vector<16x128xbf16>, vector<128x128xbf16>, vector<16x128xf32> -> vector<16x128xf32>
    %c0_9 = arith.constant 0 : index
    %c0_10 = arith.constant 0 : index
    %11 = vector.load %arg5[%c0_9, %c0_10] : memref<1x128xf32, #tpu.memory_space<vmem>>, vector<1x128xf32>
    %12 = vector.broadcast %11 : vector<1x128xf32> to vector<16x128xf32>
    %13 = arith.addf %10, %12 : vector<16x128xf32>
    %cst_11 = arith.constant 0.000000e+00 : f32
    %14 = vector.broadcast %cst_11 : f32 to vector<16x128xf32>
    %15 = arith.maximumf %13, %14 : vector<16x128xf32>
    %16 = arith.truncf %15 : vector<16x128xf32> to vector<16x128xbf16>
    %c0_12 = arith.constant 0 : index
    %c0_13 = arith.constant 0 : index
    %17 = vector.load %arg6[%c0_12, %c0_13] : memref<128x128xbf16, #tpu.memory_space<vmem>>, vector<128x128xbf16>
    %cst_14 = arith.constant dense<0.000000e+00> : vector<16x128xf32>
    %18 = tpu.matmul %16, %17, %cst_14 {dimension_numbers = #tpu.dot_dimension_numbers<[1], [0], [0], [1], [0, 0, 1, 1], [], []>} : vector<16x128xbf16>, vector<128x128xbf16>, vector<16x128xf32> -> vector<16x128xf32>
    %c0_15 = arith.constant 0 : index
    %c0_16 = arith.constant 0 : index
    %19 = vector.load %arg7[%c0_15, %c0_16] : memref<1x128xf32, #tpu.memory_space<vmem>>, vector<1x128xf32>
    %20 = vector.broadcast %19 : vector<1x128xf32> to vector<16x128xf32>
    %21 = arith.addf %18, %20 : vector<16x128xf32>
    %cst_17 = arith.constant 0.000000e+00 : f32
    %22 = vector.broadcast %cst_17 : f32 to vector<16x128xf32>
    %23 = arith.maximumf %21, %22 : vector<16x128xf32>
    %c0_18 = arith.constant 0 : index
    %c0_19 = arith.constant 0 : index
    %24 = vector.load %arg8[%c0_18, %c0_19] : memref<1x128xf32, #tpu.memory_space<vmem>>, vector<1x128xf32>
    %25 = vector.broadcast %24 : vector<1x128xf32> to vector<16x128xf32>
    %26 = arith.addf %23, %25 : vector<16x128xf32>
    %cst_20 = arith.constant dense<0xFF800000> : vector<16xf32>
    %27 = vector.multi_reduction <maximumf>, %26, %cst_20 [1] : vector<16x128xf32> to vector<16xf32>
    %28 = vector.shape_cast %27 : vector<16xf32> to vector<16x1xf32>
    %29 = vector.broadcast %28 : vector<16x1xf32> to vector<16x128xf32>
    %30 = arith.subf %26, %29 : vector<16x128xf32>
    %31 = math.exp %30 : vector<16x128xf32>
    %cst_21 = arith.constant dense<0.000000e+00> : vector<16xf32>
    %32 = vector.multi_reduction <add>, %31, %cst_21 [1] : vector<16x128xf32> to vector<16xf32>
    %33 = vector.shape_cast %32 : vector<16xf32> to vector<16x1xf32>
    %34 = math.log %33 : vector<16x1xf32>
    %35 = vector.broadcast %34 : vector<16x1xf32> to vector<16x128xf32>
    %36 = arith.subf %30, %35 : vector<16x128xf32>
    %c0_22 = arith.constant 0 : index
    %c0_23 = arith.constant 0 : index
    %37 = vector.load %arg9[%c0_22, %c0_23] : memref<16x128xf32, #tpu.memory_space<vmem>>, vector<16x128xf32>
    tpu.vector_store %arg9[%c0_22, %c0_23], %36 {strides = array<i32>} : memref<16x128xf32, #tpu.memory_space<vmem>>, vector<16x128xf32>,
    return
  }
  func.func @transform_0(%arg0: i32) -> (i32, i32) {
    %c0_i32 = arith.constant 0 : i32
    %c0_i32_0 = arith.constant 0 : i32
    return %arg0, %c0_i32 : i32, i32
  }
  func.func @transform_1(%arg0: i32) -> (i32, i32) {
    %c0_i32 = arith.constant 0 : i32
    %c0_i32_0 = arith.constant 0 : i32
    %c0_i32_1 = arith.constant 0 : i32
    return %c0_i32, %c0_i32_0 : i32, i32
  }
  func.func @transform_2(%arg0: i32) -> (i32, i32) {
    %c0_i32 = arith.constant 0 : i32
    %c0_i32_0 = arith.constant 0 : i32
    %c0_i32_1 = arith.constant 0 : i32
    return %c0_i32, %c0_i32_0 : i32, i32
  }
  func.func @transform_3(%arg0: i32) -> (i32, i32) {
    %c0_i32 = arith.constant 0 : i32
    %c0_i32_0 = arith.constant 0 : i32
    %c0_i32_1 = arith.constant 0 : i32
    return %c0_i32, %c0_i32_0 : i32, i32
  }
  func.func @transform_4(%arg0: i32) -> (i32, i32) {
    %c0_i32 = arith.constant 0 : i32
    %c0_i32_0 = arith.constant 0 : i32
    %c0_i32_1 = arith.constant 0 : i32
    return %c0_i32, %c0_i32_0 : i32, i32
  }
  func.func @transform_5(%arg0: i32) -> (i32, i32) {
    %c0_i32 = arith.constant 0 : i32
    %c0_i32_0 = arith.constant 0 : i32
    %c0_i32_1 = arith.constant 0 : i32
    return %c0_i32, %c0_i32_0 : i32, i32
  }
  func.func @transform_6(%arg0: i32) -> (i32, i32) {
    %c0_i32 = arith.constant 0 : i32
    %c0_i32_0 = arith.constant 0 : i32
    %c0_i32_1 = arith.constant 0 : i32
    return %c0_i32, %c0_i32_0 : i32, i32
  }
  func.func @transform_7(%arg0: i32) -> (i32, i32) {
    %c0_i32 = arith.constant 0 : i32
    %c0_i32_0 = arith.constant 0 : i32
    %c0_i32_1 = arith.constant 0 : i32
    return %c0_i32, %c0_i32_0 : i32, i32
  }
  func.func @transform_8(%arg0: i32) -> (i32, i32) {
    %c0_i32 = arith.constant 0 : i32
    %c0_i32_0 = arith.constant 0 : i32
    return %arg0, %c0_i32 : i32, i32
  }
}

</mosaic_0001>

<bundles_post_ra>
// kernel: tpu_custom_call.1
= control target key start
LH: loop header
LB: loop body
LE: loop exit
PB: predicated region body
PF: predicated region fallthrough
CT: control target
= control target key end

     0   :  { %13 = vsyncpa [#allocation3], 0  ;;  %s870_s0 = inlined_call_operand.hbm [shape: bf16[16,32], index: 0, kind: input, shape index: {}]   ;;  %s871_s1 = inlined_call_operand.hbm [shape: bf16[32,128], index: 1, kind: input, shape index: {}]   ;;  %s872_s2 = inlined_call_operand.vmem [shape: f32[1,128], index: 2, kind: input, shape index: {}]   ;;  %s873_s3 = inlined_call_operand.hbm [shape: bf16[128,128], index: 3, kind: input, shape index: {}]   ;;  %s874_s4 = inlined_call_operand.vmem [shape: f32[1,128], index: 4, kind: input, shape index: {}]   ;;  %s875_s5 = inlined_call_operand.hbm [shape: bf16[128,128], index: 5, kind: input, shape index: {}]   ;;  %s876_s6 = inlined_call_operand.vmem [shape: f32[1,128], index: 6, kind: input, shape index: {}]   ;;  %s877_s7 = inlined_call_operand.vmem [shape: f32[1,128], index: 7, kind: input, shape index: {}]   ;;  %s878_s8 = inlined_call_operand.hbm [shape: f32[16,128], index: 8, kind: output, shape index: {}]  }
   0x1   :  { %14 = vsyncpa [#allocation6], 0 }
   0x2   :  { %15 = vsyncpa [#allocation9], 0 }
   0x3   :  { %16 = vsyncpa [#allocation4], 0  ;;  %s692_s27 = smov [#allocation5]   ;;  %s693_s29 = smov [#allocation2]  }
   0x4   :  { %s34_s28 = sshll.u32 %s692_s27, 4  ;;  %s22_s30 = sshll.u32 %s693_s29, 4  ;;  %s35_s28 = int_to_ptr.vmem [resolvable:$true] %s34_s28  ;;  %s748_s30 = int_to_ptr.vmem [resolvable:$true] %s22_s30 }
   0x5   :  { %s574_s11 = scalar_lea.hbm %s871_s1, 256 }
   0x6   :  { %p575_p0 = scmp.ne.s32.totalorder %s871_s1, %s574_s11  ;;  %p578_p1 = scmp.lt.u32.totalorder %s574_s11, %s871_s1 }
   0x8   :  { %p580_p2 = pnand %p578_p1, %p575_p0 }
   0xa   :  { %583 = shalt.err (!%p580_p2)
}
   0xb   :  { %s584_s16 = scalar_lea.vmem %s35_s28, 256  ;;  %p589_p4 = scmp.lt.s32.totalorder %s35_s28, %s35_s28 }
   0xc   :  { %p585_p3 = scmp.ne.s32.totalorder %s35_s28, %s584_s16  ;;  %p590_p5 = scmp.lt.s32.totalorder %s584_s16, %s584_s16 }
   0xe   :  { %p591_p6 = por %p590_p5, %p589_p4 }
  0x10   :  { %p592_p7 = pnand %p591_p6, %p585_p3 }
  0x12   :  { %595 = shalt.err (!%p592_p7)
}
  0x13   :  { %s694_s17 = smov 64   ;;  %s695_s18 = smov 4  }
  0x14   :  { %40 = dma.hbm_to_vmem [thread:$0]  %s871_s1, 256, %s35_s28, [#allocation6], %s694_s17, %s694_s17, %s695_s18  }
  0x15   :  { %s596_s23 = scalar_lea.hbm %s870_s0, 128 }
  0x16   :  { %p597_p8 = scmp.ne.s32.totalorder %s870_s0, %s596_s23  ;;  %p600_p9 = scmp.lt.u32.totalorder %s596_s23, %s870_s0 }
  0x18   :  { %p602_p10 = pnand %p600_p9, %p597_p8 }
  0x1a   :  { %605 = shalt.err (!%p602_p10)
}
  0x1b   :  { %s606_s29 = scalar_lea.vmem %s748_s30, 128  ;;  %p611_p12 = scmp.lt.s32.totalorder %s748_s30, %s748_s30 }
  0x1c   :  { %p607_p11 = scmp.ne.s32.totalorder %s748_s30, %s606_s29  ;;  %p612_p13 = scmp.lt.s32.totalorder %s606_s29, %s606_s29 }
  0x1e   :  { %p613_p0 = por %p612_p13, %p611_p12 }
  0x20   :  { %p614_p1 = pnand %p613_p0, %p607_p11 }
  0x22   :  { %617 = shalt.err (!%p614_p1)
}
  0x23   :  { %28 = dma.hbm_to_vmem [thread:$0]  %s870_s0, 128, %s748_s30, [#allocation3], %s694_s17, %s694_s17, %s695_s18  }
  0x24   :  { %s696_s9 = smov [#allocation7]   ;;  %s697_s11 = smov [#allocation8]  }
  0x25   :  { %s48_s10 = sshll.u32 %s696_s9, 4  ;;  %s62_s12 = sshll.u32 %s697_s11, 4  ;;  %s49_s10 = int_to_ptr.vmem [resolvable:$true] %s48_s10  ;;  %s785_s12 = int_to_ptr.vmem [resolvable:$true] %s62_s12 }
  0x26   :  { %s618_s15 = scalar_lea.hbm %s873_s3, 1024 }
  0x27   :  { %p619_p2 = scmp.ne.s32.totalorder %s873_s3, %s618_s15  ;;  %p622_p3 = scmp.lt.u32.totalorder %s618_s15, %s873_s3 }
  0x29   :  { %p624_p4 = pnand %p622_p3, %p619_p2 }
  0x2b   :  { %627 = shalt.err (!%p624_p4)
}
  0x2c   :  { %s628_s0 = scalar_lea.vmem %s49_s10, 1024  ;;  %p633_p6 = scmp.lt.s32.totalorder %s49_s10, %s49_s10 }
  0x2d   :  { %p629_p5 = scmp.ne.s32.totalorder %s49_s10, %s628_s0  ;;  %p634_p7 = scmp.lt.s32.totalorder %s628_s0, %s628_s0 }
  0x2f   :  { %p635_p8 = por %p634_p7, %p633_p6 }
  0x31   :  { %p636_p9 = pnand %p635_p8, %p629_p5 }
  0x33   :  { %639 = shalt.err (!%p636_p9)
}
  0x34   :  { %54 = dma.hbm_to_vmem [thread:$0]  %s873_s3, 1024, %s49_s10, [#allocation6], %s694_s17, %s694_s17, %s695_s18  }
  0x35   :  { %s640_s25 = scalar_lea.hbm %s875_s5, 1024 }
  0x36   :  { %p641_p10 = scmp.ne.s32.totalorder %s875_s5, %s640_s25  ;;  %p644_p11 = scmp.lt.u32.totalorder %s640_s25, %s875_s5 }
  0x38   :  { %p646_p12 = pnand %p644_p11, %p641_p10 }
  0x3a   :  { %649 = shalt.err (!%p646_p12)
}
  0x3b   :  { %s650_s28 = scalar_lea.vmem %s785_s12, 1024  ;;  %p655_p0 = scmp.lt.s32.totalorder %s785_s12, %s785_s12 }
  0x3c   :  { %p651_p13 = scmp.ne.s32.totalorder %s785_s12, %s650_s28  ;;  %p656_p1 = scmp.lt.s32.totalorder %s650_s28, %s650_s28 }
  0x3e   :  { %p657_p2 = por %p656_p1, %p655_p0 }
  0x40   :  { %p658_p3 = pnand %p657_p2, %p651_p13 }
  0x42   :  { %661 = shalt.err (!%p658_p3)
}
  0x43   :  { %68 = dma.hbm_to_vmem [thread:$0]  %s875_s5, 1024, %s785_s12, [#allocation9], %s694_s17, %s694_s17, %s695_s18  }
  0x44   :  { %684 = dma.done.wait [#allocation3], 128  }
  0x45   :  { %685 = vsyncadd [#allocation3], 4294967168 }
  0x46   :  { %686 = dma.done.wait [#allocation6], 1280  }
  0x47   :  { %687 = vsyncadd [#allocation6], 4294966016 }
  0x48   :  { %688 = dma.done.wait [#allocation9], 1024  }
  0x49   :  { %689 = vsyncadd [#allocation9], 4294966272  ;;  %v698_v0 = vmov 0.0   ;;  %vm699_vm0 = vmmov 0   ;;  %v547_v1 = vld [vmem:[#allocation5] sm:$0xff]   ;;  %v548_v2 = vld [vmem:[#allocation5 + $0x8] sm:$0xff]  }
  0x4a   :  { %488 = vmatprep.subr.bf16.mxu0 %v698_v0  ;;  %492 = vmatprep.mubr.msk.bf16.mxu0 %vm699_vm0, %v698_v0  ;;  %v550_v3 = vld [vmem:[#allocation7] sm:$0xff]   ;;  %v549_v4 = vld [vmem:[#allocation2] sm:$0xff]   ;;  %vm116_vm1 = vcmask 261120   ;;  %v552_v6 = vld [vmem:[#allocation7 + $0x10] sm:$0xff]  }
  0x4b   :  { %496 = vmatprep.subr.bf16.mxu1 %v698_v0  ;;  %512 = vmatprep.mubr.msk.bf16.mxu1 %vm699_vm0, %v698_v0  ;;  %v551_v5 = vld [vmem:[#allocation7 + $0x8] sm:$0xff]   ;;  %v553_v7 = vld [vmem:[#allocation7 + $0x18] sm:$0xff]   ;;  %v554_v8 = vld [vmem:[#allocation7 + $0x20] sm:$0xff]  }
  0x4c   :  { %489 = vmatpush3.bf16.msra.mxu0 %v547_v1  ;;  %497 = vmatpush3.bf16.msra.mxu1 %v550_v3  ;;  %v555_v9 = vld [vmem:[#allocation7 + $0x28] sm:$0xff]   ;;  %v556_v10 = vld [vmem:[#allocation7 + $0x30] sm:$0xff]   ;;  %v557_v11 = vld [vmem:[#allocation7 + $0x38] sm:$0xff]  }
  0x4d   :  { %490 = vmatprep.subr.bf16.mxu0 %v698_v0  ;;  %498 = vmatprep.subr.bf16.mxu1 %v698_v0  ;;  %v558_v12 = vld [vmem:[#allocation8] sm:$0xff]   ;;  %v559_v13 = vld [vmem:[#allocation8 + $0x8] sm:$0xff]   ;;  %v560_v14 = vld [vmem:[#allocation8 + $0x10] sm:$0xff]  }
  0x4e   :  { %v561_v15 = vld [vmem:[#allocation8 + $0x18] sm:$0xff]   ;;  %v562_v16 = vld [vmem:[#allocation8 + $0x20] sm:$0xff]   ;;  %v563_v17 = vld [vmem:[#allocation8 + $0x28] sm:$0xff]  }
  0x4f   :  { %v443_v18 = vld [vmem:[%s872_s2] ss:$0 sm:$0xff]  ;;  %v564_v28 = vld [vmem:[#allocation8 + $0x30] sm:$0xff]   ;;  %v565_v29 = vld [vmem:[#allocation8 + $0x38] sm:$0xff]  }
  0x50   :  { %491 = vmatpush3.bf16.msra.mxu0 %v548_v2  ;;  %499 = vmatpush3.bf16.msra.mxu1 %v551_v5  ;;  %v448_v30 = vld [vmem:[%s874_s4] ss:$0 sm:$0xff] }
  0x51   :  { %516 = vmatprep.subr.bf16.mxu0 %v698_v0  ;;  %500 = vmatprep.subr.bf16.mxu1 %v698_v0  ;;  %v457_v40 = vld [vmem:[%s876_s6] ss:$0 sm:$0xff]  ;;  %s700_s6 = smov [#allocation10]  }
  0x52   :  { %v466_v45 = vld [vmem:[%s877_s7] ss:$0 sm:$0xff]  ;;  %s429_s7 = sshll.u32 %s700_s6, 4  ;;  %s430_s7 = int_to_ptr.vmem [resolvable:$true] %s429_s7 }
  0x53   :  { %493 = vmatmul.mubr.msk.bf16.vlgmr.msra.gmra.mrb[0].mxu0 %vm116_vm1, %v549_v4  ;;  %s662_s13 = scalar_lea.vmem %s430_s7, 256  ;;  %p667_p5 = scmp.lt.s32.totalorder %s430_s7, %s430_s7 }
  0x54   :  { %532 = vmatprep.mubr.msk.bf16.mxu0 %vm699_vm0, %v698_v0  ;;  %501 = vmatpush3.bf16.msra.mxu1 %v552_v6  ;;  %p663_p4 = scmp.ne.s32.totalorder %s430_s7, %s662_s13  ;;  %p668_p6 = scmp.lt.s32.totalorder %s662_s13, %s662_s13 }
  0x55   :  { %502 = vmatprep.subr.bf16.mxu1 %v698_v0  ;;  %517 = vmatpush3.bf16.msra.mxu0 %v558_v12 }
  0x56   :  { %518 = vmatprep.subr.bf16.mxu0 %v698_v0  ;;  %p669_p7 = por %p668_p6, %p667_p5 }
  0x58   :  { %503 = vmatpush3.bf16.msra.mxu1 %v553_v7  ;;  %p670_p8 = pnand %p669_p7, %p663_p4 }
  0x59   :  { %504 = vmatprep.subr.bf16.mxu1 %v698_v0  ;;  %519 = vmatpush3.bf16.msra.mxu0 %v559_v13 }
  0x5a   :  { %520 = vmatprep.subr.bf16.mxu0 %v698_v0 }
  0x5c   :  { %505 = vmatpush3.bf16.msra.mxu1 %v554_v8 }
  0x5d   :  { %506 = vmatprep.subr.bf16.mxu1 %v698_v0  ;;  %521 = vmatpush3.bf16.msra.mxu0 %v560_v14 }
  0x5e   :  { %522 = vmatprep.subr.bf16.mxu0 %v698_v0 }
  0x60   :  { %507 = vmatpush3.bf16.msra.mxu1 %v555_v9 }
  0x61   :  { %508 = vmatprep.subr.bf16.mxu1 %v698_v0  ;;  %523 = vmatpush3.bf16.msra.mxu0 %v561_v15 }
  0x62   :  { %524 = vmatprep.subr.bf16.mxu0 %v698_v0 }
  0x64   :  { %509 = vmatpush3.bf16.msra.mxu1 %v556_v10 }
  0x65   :  { %510 = vmatprep.subr.bf16.mxu1 %v698_v0  ;;  %525 = vmatpush3.bf16.msra.mxu0 %v562_v16 }
  0x66   :  { %526 = vmatprep.subr.bf16.mxu0 %v698_v0 }
  0x68   :  { %511 = vmatpush3.bf16.msra.mxu1 %v557_v11 }
  0x69   :  { %527 = vmatpush3.bf16.msra.mxu0 %v563_v17 }
  0x6a   :  { %528 = vmatprep.subr.bf16.mxu0 %v698_v0 }
  0x6d   :  { %529 = vmatpush3.bf16.msra.mxu0 %v564_v28 }
  0x6e   :  { %530 = vmatprep.subr.bf16.mxu0 %v698_v0 }
  0x71   :  { %531 = vmatpush3.bf16.msra.mxu0 %v565_v29 }
 0x126   :  { %v154_v19 = vpop.f32.mrb[0].mxu0 }
 0x127   :  { %v155_v20 = vadd.f32 %v443_v18, %v154_v19  ;;  %v494_v21 = vpop.f32.mrb[1].mxu0 }
 0x128   :  { %v157_v22 = vpop.f32.mrb[2].mxu0 }
 0x129   :  { %v158_v23 = vadd.f32 %v443_v18, %v157_v22  ;;  %v495_v24 = vpop.f32.mrb[3].mxu0  ;;  %v161_v25 = vmax.f32 %v155_v20, 0.0 }
 0x12b   :  { %v162_v26 = vmax.f32 %v158_v23, 0.0 }
 0x12d   :  { %v163_v27 = vpack.c.bf16 %v162_v26, %v161_v25 }
 0x12f   :  { %513 = vmatmul.mubr.bf16.vlgmr.msra.gmra.mrb[0].mxu1 %v163_v27 }
 0x202   :  { %v269_v31 = vpop.f32.mrb[0].mxu1 }
 0x203   :  { %v270_v32 = vadd.f32 %v448_v30, %v269_v31  ;;  %v514_v33 = vpop.f32.mrb[1].mxu1 }
 0x204   :  { %v272_v34 = vpop.f32.mrb[2].mxu1 }
 0x205   :  { %v273_v35 = vadd.f32 %v448_v30, %v272_v34  ;;  %v515_v36 = vpop.f32.mrb[3].mxu1  ;;  %v276_v37 = vmax.f32 %v270_v32, 0.0 }
 0x207   :  { %v277_v38 = vmax.f32 %v273_v35, 0.0 }
 0x209   :  { %v278_v39 = vpack.c.bf16 %v277_v38, %v276_v37 }
 0x20b   :  { %533 = vmatmul.mubr.bf16.vlgmr.msra.gmra.mrb[4].mxu0 %v278_v39 }
 0x2de   :  { %v384_v41 = vpop.f32.mrb[4].mxu0 }
 0x2df   :  { %v385_v42 = vadd.f32 %v457_v40, %v384_v41  ;;  %v534_v43 = vpop.f32.mrb[5].mxu0 }
 0x2e0   :  { %v387_v44 = vpop.f32.mrb[6].mxu0 }
 0x2e1   :  { %v391_v46 = vmax.f32 %v385_v42, 0.0  ;;  %v388_v47 = vadd.f32 %v457_v40, %v387_v44  ;;  %v535_v48 = vpop.f32.mrb[7].mxu0 }
 0x2e3   :  { %v392_v49 = vmax.f32 %v388_v47, 0.0  ;;  %v400_v50 = vadd.f32 %v466_v45, %v391_v46 }
 0x2e5   :  { %402 = vmax.xlane.f32.xlu0 %v400_v50  ;;  %v401_v51 = vadd.f32 %v466_v45, %v392_v49 }
 0x2e9   :  { %404 = vmax.xlane.f32.xlu0 %v401_v51 }
 0x372   :  { %v403_v52 = vpop.xlane.xlu0 %402 }
 0x373   :  { %v406_v53 = vsub.f32 %v400_v50, %v403_v52 }
 0x375   :  { %v408_v54 = vmul.f32 1.442695, %v406_v53 }
 0x376   :  { %v405_v55 = vpop.xlane.xlu0 %404 }
 0x377   :  { %v407_v56 = vsub.f32 %v401_v51, %v405_v55  ;;  %566 = vpow2.f32 %v408_v54 }
 0x379   :  { %v410_v57 = vmul.f32 1.442695, %v407_v56 }
 0x37b   :  { %568 = vpow2.f32 %v410_v57 }
 0x381   :  { %v567_v58 = vpop.eup %566 }
 0x382   :  { %412 = vadd.xlane.f32.xlu1 %v567_v58 }
 0x385   :  { %v569_v59 = vpop.eup %568 }
 0x386   :  { %414 = vadd.xlane.f32.xlu1 %v569_v59 }
 0x40f   :  { %v413_v60 = vpop.xlane.xlu1 %412 }
 0x410   :  { %570 = vlog2.f32 %v413_v60 }
 0x413   :  { %v415_v61 = vpop.xlane.xlu1 %414 }
 0x414   :  { %572 = vlog2.f32 %v415_v61 }
 0x41a   :  { %v571_v62 = vpop.eup %570 }
 0x41b   :  { %v417_v63 = vmul.f32 0.6931472, %v571_v62 }
 0x41d   :  { %v420_v0 = vsub.f32 %v406_v53, %v417_v63 }
 0x41e   :  { %v573_v1 = vpop.eup %572 }
 0x41f   :  { %422 = vst [vmem:[#allocation10] sm:$0xff] %v420_v0  ;;  %v419_v2 = vmul.f32 0.6931472, %v573_v1 }
 0x421   :  { %v421_v3 = vsub.f32 %v407_v56, %v419_v2 }
 0x423   :  { %423 = vst [vmem:[#allocation10 + $0x8] sm:$0xff] %v421_v3 }
 0x424   :  { %673 = shalt.err (!%p670_p8)
}
 0x425   :  { %s674_s16 = scalar_lea.hbm %s878_s8, 256 }
 0x426   :  { %p675_p9 = scmp.ne.s32.totalorder %s878_s8, %s674_s16  ;;  %p678_p10 = scmp.lt.u32.totalorder %s674_s16, %s878_s8 }
 0x428   :  { %p680_p11 = pnand %p678_p10, %p675_p9 }
 0x42a   :  { %683 = shalt.err (!%p680_p11)
}
 0x42b   :  { %s701_s30 = smov 128   ;;  %s702_s22 = smov 8  }
 0x42c   :  { %435 = dma.vmem_to_hbm [thread:$0]  %s430_s7, 256, %s878_s8, [#allocation4], %s701_s30, %s701_s30, %s702_s22  }
 0x42d   :  { %690 = dma.done.wait [#allocation4], 256  }
 0x42e   :  { %691 = vsyncadd [#allocation4], 4294967040 }
 0x42f   :  { %439 = vsyncpa [#allocation3], 1 }
 0x430   :  { %440 = vsyncpa [#allocation6], 1 }
 0x431   :  { %441 = vsyncpa [#allocation9], 1 }
 0x432   :  { %442 = vsyncpa [#allocation4], 1 }

</bundles_post_ra>
